<compile_context>
chip_gen: v7x
topology: tpu7x:2x2x1
jax: 0.10.0
libtpu: 0.0.40
codegen_flags: <defaults>
</compile_context>

<pallas_src>
import jax
import jax.numpy as jnp
from jax.experimental import pallas as pl
from jax.experimental.pallas import tpu as pltpu

# ---- model configuration (synthetic, consistent with the module's __init__) ----
OBS_DIM = 20          # raw observation dim (obs has extra features that get sliced off)
BASE_OBS_DIM = 16     # algo_config.base_obs_dim
HIDDEN = 32           # preprocess_net hidden / output_dim
ACTION_DIM = 8        # int(np.prod(action_shape)) with action_shape=(8,)
BATCH = 4
SOFTMAX_OUTPUT = True
MAX_BLOCK_B = 512     # batch-tile rows (multiple of 8; ~85% HBM roofline regime)


def _round_up(x, m):
    return ((x + m - 1) // m) * m


def _actor_kernel(x_ref,
                  w1_ref, b1_ref,      # preprocess layer 1: base_obs_dim -> hidden
                  w2_ref, b2_ref,      # preprocess layer 2: hidden -> hidden
                  w3_ref, b3_ref,      # last MLP (hidden_sizes=()): hidden -> action_dim
                  out_ref):
    x = x_ref[...]                      # (bb, BASE_OBS_DIM) f32, already sliced in wrapper
    b1 = b1_ref[...]                    # (1, HIDDEN) f32 — lane-aligned row broadcast
    b2 = b2_ref[...]
    b3 = b3_ref[...]                    # (1, ACTION_DIM)

    # preprocess_net: Linear + ReLU, Linear + ReLU (bf16 weights, f32 accumulation)
    h1 = jnp.dot(x.astype(jnp.bfloat16), w1_ref[...],
                 preferred_element_type=jnp.float32) + b1
    h1 = jnp.maximum(h1, 0.0)
    h2 = jnp.dot(h1.astype(jnp.bfloat16), w2_ref[...],
                 preferred_element_type=jnp.float32) + b2
    h2 = jnp.maximum(h2, 0.0)

    # self.last(logits): single Linear (hidden_sizes=())
    logits = jnp.dot(h2.astype(jnp.bfloat16), w3_ref[...],
                     preferred_element_type=jnp.float32) + b3

    if SOFTMAX_OUTPUT:
        # softmax along dim=-1 (numerically stable); reciprocal on the EUP slot
        m = jnp.max(logits, axis=-1, keepdims=True)
        e = jnp.exp(logits - m)
        denom = jnp.sum(e, axis=-1, keepdims=True)
        logits = e * pl.reciprocal(denom, approx=True)

    out_ref[...] = logits.astype(out_ref.dtype)


def actor_forward(obs, params, state=None, block_b=MAX_BLOCK_B):
    """Pallas equivalent of Actor.forward: returns (probs_or_logits, hidden)."""
    w1, b1, w2, b2, w3, b3 = params
    B = obs.shape[0]

    # obs[:, :base_obs_dim] in the wrapper (fuses with upstream XLA producers)
    x = obs[:, :BASE_OBS_DIM].astype(jnp.float32)

    # batch tile: multiple of 8 sublanes, capped at MAX_BLOCK_B; pad batch to a
    # whole number of tiles (padded rows are sliced off after the call).
    bb = min(block_b, _round_up(B, 8))
    b_pad = _round_up(B, bb)
    if b_pad != B:
        x = jnp.pad(x, ((0, b_pad - B), (0, 0)))
    grid = (b_pad // bb,)

    flops = 2 * b_pad * (BASE_OBS_DIM * HIDDEN + HIDDEN * HIDDEN + HIDDEN * ACTION_DIM)
    bytes_accessed = (x.size * 4
                      + sum(int(p.size) * p.dtype.itemsize for p in params)
                      + b_pad * ACTION_DIM * 4)
    cost = pl.CostEstimate(flops=flops,
                           transcendentals=b_pad * (ACTION_DIM + 1),
                           bytes_accessed=bytes_accessed)

    out = pl.pallas_call(
        _actor_kernel,
        out_shape=jax.ShapeDtypeStruct((b_pad, ACTION_DIM), jnp.float32),
        grid=grid,
        in_specs=[
            pl.BlockSpec((bb, BASE_OBS_DIM), lambda i: (i, 0)),   # obs tile: marches over batch
            pl.BlockSpec(w1.shape, lambda i: (0, 0)),             # weights/biases: VMEM-resident
            pl.BlockSpec(b1.shape, lambda i: (0, 0)),
            pl.BlockSpec(w2.shape, lambda i: (0, 0)),
            pl.BlockSpec(b2.shape, lambda i: (0, 0)),
            pl.BlockSpec(w3.shape, lambda i: (0, 0)),
            pl.BlockSpec(b3.shape, lambda i: (0, 0)),
        ],
        out_specs=pl.BlockSpec((bb, ACTION_DIM), lambda i: (i, 0)),
        compiler_params=pltpu.CompilerParams(
            dimension_semantics=("parallel",)),                   # v7x: shard batch over 2 TCs
        cost_estimate=cost,
    )(x, w1, b1, w2, b2, w3, b3)

    # hidden/state passthrough, like the PyTorch module (preprocess returns state unchanged)
    return out[:B], state


def init_params(key):
    """Deterministic synthetic parameter init (shapes implied by __init__).

    Weights in bf16 (MXU-native, f32 accumulation in-kernel); biases as
    lane-aligned (1, N) f32 rows.
    """
    k1, k2, k3 = jax.random.split(key, 3)
    scale = 0.1
    w1 = (scale * jax.random.normal(k1, (BASE_OBS_DIM, HIDDEN), jnp.float32)).astype(jnp.bfloat16)
    b1 = jnp.zeros((1, HIDDEN), jnp.float32)
    w2 = (scale * jax.random.normal(k2, (HIDDEN, HIDDEN), jnp.float32)).astype(jnp.bfloat16)
    b2 = jnp.zeros((1, HIDDEN), jnp.float32)
    w3 = (scale * jax.random.normal(k3, (HIDDEN, ACTION_DIM), jnp.float32)).astype(jnp.bfloat16)
    b3 = jnp.zeros((1, ACTION_DIM), jnp.float32)
    return (w1, b1, w2, b2, w3, b3)


if __name__ == "__main__":
    key = jax.random.PRNGKey(0)
    k_obs, k_params = jax.random.split(key)

    obs = jax.random.normal(k_obs, (BATCH, OBS_DIM), jnp.float32)
    params = init_params(k_params)

    probs, hidden = actor_forward(obs, params, state=None)
    probs = jax.block_until_ready(probs)

    # sanity: softmax rows sum to 1 (approx reciprocal -> relaxed tolerance)
    row_sums = jnp.sum(probs, axis=-1)
    assert probs.shape == (BATCH, ACTION_DIM)
    assert bool(jnp.all(jnp.abs(row_sums - 1.0) < 2e-3))
    assert bool(jnp.all(probs >= 0.0))
    assert hidden is None

    print("KERNEL_OK")
</pallas_src>

<mosaic_0001>
module attributes {stable_mosaic.version = 11 : i64} {
  func.func @_actor_kernel(%arg0: i32, %arg1: memref<8x16xf32, #tpu.memory_space<vmem>>, %arg2: memref<16x32xbf16, #tpu.memory_space<vmem>>, %arg3: memref<1x32xf32, #tpu.memory_space<vmem>>, %arg4: memref<32x32xbf16, #tpu.memory_space<vmem>>, %arg5: memref<1x32xf32, #tpu.memory_space<vmem>>, %arg6: memref<32x8xbf16, #tpu.memory_space<vmem>>, %arg7: memref<1x8xf32, #tpu.memory_space<vmem>>, %arg8: memref<8x8xf32, #tpu.memory_space<vmem>>) attributes {dimension_semantics = [#tpu.dimension_semantics<parallel>], iteration_bounds = array<i64: 1>, scalar_prefetch = 0 : i64, scratch_operands = 0 : i64, tpu.core_type = #tpu.core_type<tc>, window_params = [{transform_indices = @transform_0, window_bounds = array<i64: 8, 16>}, {pipeline_mode = #tpu.pipeline_mode<synchronous>, transform_indices = @transform_1, window_bounds = array<i64: 16, 32>}, {pipeline_mode = #tpu.pipeline_mode<synchronous>, transform_indices = @transform_2, window_bounds = array<i64: 1, 32>}, {pipeline_mode = #tpu.pipeline_mode<synchronous>, transform_indices = @transform_3, window_bounds = array<i64: 32, 32>}, {pipeline_mode = #tpu.pipeline_mode<synchronous>, transform_indices = @transform_4, window_bounds = array<i64: 1, 32>}, {pipeline_mode = #tpu.pipeline_mode<synchronous>, transform_indices = @transform_5, window_bounds = array<i64: 32, 8>}, {pipeline_mode = #tpu.pipeline_mode<synchronous>, transform_indices = @transform_6, window_bounds = array<i64: 1, 8>}, {transform_indices = @transform_7, window_bounds = array<i64: 8, 8>}]} {
    %c0 = arith.constant 0 : index
    %c0_0 = arith.constant 0 : index
    %0 = vector.load %arg1[%c0, %c0_0] : memref<8x16xf32, #tpu.memory_space<vmem>>, vector<8x16xf32>
    %c0_1 = arith.constant 0 : index
    %c0_2 = arith.constant 0 : index
    %1 = vector.load %arg3[%c0_1, %c0_2] : memref<1x32xf32, #tpu.memory_space<vmem>>, vector<1x32xf32>
    %c0_3 = arith.constant 0 : index
    %c0_4 = arith.constant 0 : index
    %2 = vector.load %arg5[%c0_3, %c0_4] : memref<1x32xf32, #tpu.memory_space<vmem>>, vector<1x32xf32>
    %c0_5 = arith.constant 0 : index
    %c0_6 = arith.constant 0 : index
    %3 = vector.load %arg7[%c0_5, %c0_6] : memref<1x8xf32, #tpu.memory_space<vmem>>, vector<1x8xf32>
    %4 = arith.truncf %0 : vector<8x16xf32> to vector<8x16xbf16>
    %c0_7 = arith.constant 0 : index
    %c0_8 = arith.constant 0 : index
    %5 = vector.load %arg2[%c0_7, %c0_8] : memref<16x32xbf16, #tpu.memory_space<vmem>>, vector<16x32xbf16>
    %cst = arith.constant dense<0.000000e+00> : vector<8x32xf32>
    %6 = tpu.matmul %4, %5, %cst {dimension_numbers = #tpu.dot_dimension_numbers<[1], [0], [0], [1], [0, 0, 1, 1], [], []>} : vector<8x16xbf16>, vector<16x32xbf16>, vector<8x32xf32> -> vector<8x32xf32>
    %7 = vector.broadcast %1 : vector<1x32xf32> to vector<8x32xf32>
    %8 = arith.addf %6, %7 : vector<8x32xf32>
    %cst_9 = arith.constant 0.000000e+00 : f32
    %9 = vector.broadcast %cst_9 : f32 to vector<8x32xf32>
    %10 = arith.maximumf %8, %9 : vector<8x32xf32>
    %11 = arith.truncf %10 : vector<8x32xf32> to vector<8x32xbf16>
    %c0_10 = arith.constant 0 : index
    %c0_11 = arith.constant 0 : index
    %12 = vector.load %arg4[%c0_10, %c0_11] : memref<32x32xbf16, #tpu.memory_space<vmem>>, vector<32x32xbf16>
    %cst_12 = arith.constant dense<0.000000e+00> : vector<8x32xf32>
    %13 = tpu.matmul %11, %12, %cst_12 {dimension_numbers = #tpu.dot_dimension_numbers<[1], [0], [0], [1], [0, 0, 1, 1], [], []>} : vector<8x32xbf16>, vector<32x32xbf16>, vector<8x32xf32> -> vector<8x32xf32>
    %14 = vector.broadcast %2 : vector<1x32xf32> to vector<8x32xf32>
    %15 = arith.addf %13, %14 : vector<8x32xf32>
    %cst_13 = arith.constant 0.000000e+00 : f32
    %16 = vector.broadcast %cst_13 : f32 to vector<8x32xf32>
    %17 = arith.maximumf %15, %16 : vector<8x32xf32>
    %18 = arith.truncf %17 : vector<8x32xf32> to vector<8x32xbf16>
    %c0_14 = arith.constant 0 : index
    %c0_15 = arith.constant 0 : index
    %19 = vector.load %arg6[%c0_14, %c0_15] : memref<32x8xbf16, #tpu.memory_space<vmem>>, vector<32x8xbf16>
    %cst_16 = arith.constant dense<0.000000e+00> : vector<8x8xf32>
    %20 = tpu.matmul %18, %19, %cst_16 {dimension_numbers = #tpu.dot_dimension_numbers<[1], [0], [0], [1], [0, 0, 1, 1], [], []>} : vector<8x32xbf16>, vector<32x8xbf16>, vector<8x8xf32> -> vector<8x8xf32>
    %21 = vector.broadcast %3 : vector<1x8xf32> to vector<8x8xf32>
    %22 = arith.addf %20, %21 : vector<8x8xf32>
    %cst_17 = arith.constant dense<0xFF800000> : vector<8xf32>
    %23 = vector.multi_reduction <maximumf>, %22, %cst_17 [1] : vector<8x8xf32> to vector<8xf32>
    %24 = vector.shape_cast %23 : vector<8xf32> to vector<8x1xf32>
    %25 = vector.broadcast %24 : vector<8x1xf32> to vector<8x8xf32>
    %26 = arith.subf %22, %25 : vector<8x8xf32>
    %27 = math.exp %26 : vector<8x8xf32>
    %cst_18 = arith.constant dense<0.000000e+00> : vector<8xf32>
    %28 = vector.multi_reduction <add>, %27, %cst_18 [1] : vector<8x8xf32> to vector<8xf32>
    %29 = vector.shape_cast %28 : vector<8xf32> to vector<8x1xf32>
    %30 = tpu.reciprocal %29 {approx = true} : vector<8x1xf32> -> vector<8x1xf32>
    %31 = vector.broadcast %30 : vector<8x1xf32> to vector<8x8xf32>
    %32 = arith.mulf %27, %31 : vector<8x8xf32>
    %c0_19 = arith.constant 0 : index
    %c0_20 = arith.constant 0 : index
    %33 = vector.load %arg8[%c0_19, %c0_20] : memref<8x8xf32, #tpu.memory_space<vmem>>, vector<8x8xf32>
    tpu.vector_store %arg8[%c0_19, %c0_20], %32 {strides = array<i32>} : memref<8x8xf32, #tpu.memory_space<vmem>>, vector<8x8xf32>,
    return
  }
  func.func @transform_0(%arg0: i32) -> (i32, i32) {
    %c0_i32 = arith.constant 0 : i32
    %c0_i32_0 = arith.constant 0 : i32
    return %arg0, %c0_i32 : i32, i32
  }
  func.func @transform_1(%arg0: i32) -> (i32, i32) {
    %c0_i32 = arith.constant 0 : i32
    %c0_i32_0 = arith.constant 0 : i32
    %c0_i32_1 = arith.constant 0 : i32
    return %c0_i32, %c0_i32_0 : i32, i32
  }
  func.func @transform_2(%arg0: i32) -> (i32, i32) {
    %c0_i32 = arith.constant 0 : i32
    %c0_i32_0 = arith.constant 0 : i32
    %c0_i32_1 = arith.constant 0 : i32
    return %c0_i32, %c0_i32_0 : i32, i32
  }
  func.func @transform_3(%arg0: i32) -> (i32, i32) {
    %c0_i32 = arith.constant 0 : i32
    %c0_i32_0 = arith.constant 0 : i32
    %c0_i32_1 = arith.constant 0 : i32
    return %c0_i32, %c0_i32_0 : i32, i32
  }
  func.func @transform_4(%arg0: i32) -> (i32, i32) {
    %c0_i32 = arith.constant 0 : i32
    %c0_i32_0 = arith.constant 0 : i32
    %c0_i32_1 = arith.constant 0 : i32
    return %c0_i32, %c0_i32_0 : i32, i32
  }
  func.func @transform_5(%arg0: i32) -> (i32, i32) {
    %c0_i32 = arith.constant 0 : i32
    %c0_i32_0 = arith.constant 0 : i32
    %c0_i32_1 = arith.constant 0 : i32
    return %c0_i32, %c0_i32_0 : i32, i32
  }
  func.func @transform_6(%arg0: i32) -> (i32, i32) {
    %c0_i32 = arith.constant 0 : i32
    %c0_i32_0 = arith.constant 0 : i32
    %c0_i32_1 = arith.constant 0 : i32
    return %c0_i32, %c0_i32_0 : i32, i32
  }
  func.func @transform_7(%arg0: i32) -> (i32, i32) {
    %c0_i32 = arith.constant 0 : i32
    %c0_i32_0 = arith.constant 0 : i32
    return %arg0, %c0_i32 : i32, i32
  }
}

</mosaic_0001>

<bundles_post_ra>
// kernel: tpu_custom_call.1
= control target key start
LH: loop header
LB: loop body
LE: loop exit
PB: predicated region body
PF: predicated region fallthrough
CT: control target
= control target key end

     0   :  { %12 = vsyncpa [#allocation3], 0  ;;  %s469_s0 = inlined_call_operand.vmem [shape: f32[8,16], index: 0, kind: input, shape index: {}]   ;;  %s470_s1 = inlined_call_operand.hbm [shape: bf16[16,32], index: 1, kind: input, shape index: {}]   ;;  %s471_s2 = inlined_call_operand.vmem [shape: f32[1,32], index: 2, kind: input, shape index: {}]   ;;  %s472_s3 = inlined_call_operand.vmem [shape: bf16[32,32], index: 3, kind: input, shape index: {}]   ;;  %s473_s4 = inlined_call_operand.vmem [shape: f32[1,32], index: 4, kind: input, shape index: {}]   ;;  %s474_s5 = inlined_call_operand.vmem [shape: bf16[32,8], index: 5, kind: input, shape index: {}]   ;;  %s475_s6 = inlined_call_operand.vmem [shape: f32[1,8], index: 6, kind: input, shape index: {}]   ;;  %s476_s7 = inlined_call_operand.hbm [shape: f32[8,8], index: 7, kind: output, shape index: {}]  }
   0x1   :  { %13 = vsyncpa [#allocation4], 0  ;;  %s372_s24 = smov [#allocation2]   ;;  %s324_s28 = scalar_lea.hbm %s470_s1, 128 }
   0x2   :  { %s21_s25 = sshll.u32 %s372_s24, 4  ;;  %p325_p0 = scmp.ne.s32.totalorder %s470_s1, %s324_s28  ;;  %s22_s25 = int_to_ptr.vmem [resolvable:$true] %s21_s25 }
   0x3   :  { %p328_p1 = scmp.lt.u32.totalorder %s324_s28, %s470_s1 }
   0x5   :  { %p330_p2 = pnand %p328_p1, %p325_p0 }
   0x7   :  { %333 = shalt.err (!%p330_p2)
}
   0x8   :  { %s334_s10 = scalar_lea.vmem %s22_s25, 128  ;;  %p339_p4 = scmp.lt.s32.totalorder %s22_s25, %s22_s25 }
   0x9   :  { %p335_p3 = scmp.ne.s32.totalorder %s22_s25, %s334_s10  ;;  %p340_p5 = scmp.lt.s32.totalorder %s334_s10, %s334_s10 }
   0xb   :  { %p341_p6 = por %p340_p5, %p339_p4 }
   0xd   :  { %p342_p7 = pnand %p341_p6, %p335_p3 }
   0xf   :  { %345 = shalt.err (!%p342_p7)
}
  0x10   :  { %s373_s11 = smov 64   ;;  %s374_s12 = smov 4  }
  0x11   :  { %27 = dma.hbm_to_vmem [thread:$0]  %s470_s1, 128, %s22_s25, [#allocation3], %s373_s11, %s373_s11, %s374_s12  }
  0x12   :  { %368 = dma.done.wait [#allocation3], 128  }
  0x13   :  { %369 = vsyncadd [#allocation3], 4294967168  ;;  %v375_v0 = vmov 0.0   ;;  %vm376_vm0 = vmmov 0   ;;  %v315_v1 = vld [vmem:[#allocation2] sm:$0xff]   ;;  %vm61_vm1 = vcmask 130048  }
  0x14   :  { %287 = vmatprep.subr.bf16.mxu0 %v375_v0  ;;  %289 = vmatprep.mubr.msk.bf16.mxu0 %vm376_vm0, %v375_v0  ;;  %v42_v2 = vld [vmem:[%s469_s0] sm:$0xff]  ;;  %v317_v5 = vld [vmem:[%s472_s3 + $0x8] sm:$0xff]   ;;  %vm129_vm2 = vcmask 261120   ;;  %vm240_vm3 = vcmask 64512  }
  0x15   :  { %293 = vmatprep.subr.bf16.mxu1 %v375_v0  ;;  %297 = vmatprep.mubr.msk.bf16.mxu1 %vm376_vm0, %v375_v0  ;;  %v46_v3 = vpack.c.bf16 %v42_v2, %v42_v2  ;;  %v316_v4 = vld [vmem:[%s472_s3] sm:$0xff]   ;;  %v319_v15 = vld [vmem:[%s474_s5 + $0x8] sm:$0xff]  }
  0x16   :  { %288 = vmatpush3.bf16.msra.mxu0 %v315_v1  ;;  %294 = vmatpush3.bf16.msra.mxu1 %v316_v4  ;;  %v318_v6 = vld [vmem:[%s474_s5] sm:$0xff]  }
  0x17   :  { %301 = vmatprep.subr.bf16.mxu0 %v375_v0  ;;  %295 = vmatprep.subr.bf16.mxu1 %v375_v0  ;;  %v268_v7 = vld [vmem:[%s471_s2] ss:$0 sm:$0xff] }
  0x18   :  { %v271_v16 = vld [vmem:[%s473_s4] ss:$0 sm:$0xff]  ;;  %s377_s4 = smov [#allocation5]  }
  0x19   :  { %290 = vmatmul.mubr.msk.bf16.vlgmr.msra.gmra.mrb[0].mxu0 %vm61_vm1, %v46_v3  ;;  %v275_v24 = vld [vmem:[%s475_s6] ss:$0 sm:$0xff]  ;;  %s259_s5 = sshll.u32 %s377_s4, 4  ;;  %s260_s5 = int_to_ptr.vmem [resolvable:$true] %s259_s5 }
  0x1a   :  { %305 = vmatprep.mubr.msk.bf16.mxu0 %vm376_vm0, %v375_v0  ;;  %296 = vmatpush3.bf16.msra.mxu1 %v317_v5  ;;  %s346_s6 = scalar_lea.vmem %s260_s5, 128  ;;  %p351_p9 = scmp.lt.s32.totalorder %s260_s5, %s260_s5 }
  0x1b   :  { %302 = vmatpush3.bf16.msra.mxu0 %v318_v6  ;;  %p347_p8 = scmp.ne.s32.totalorder %s260_s5, %s346_s6  ;;  %p352_p10 = scmp.lt.s32.totalorder %s346_s6, %s346_s6 }
  0x1c   :  { %303 = vmatprep.subr.bf16.mxu0 %v375_v0 }
  0x1d   :  { %p353_p11 = por %p352_p10, %p351_p9 }
  0x1f   :  { %304 = vmatpush3.bf16.msra.mxu0 %v319_v15  ;;  %p354_p12 = pnand %p353_p11, %p347_p8 }
  0xec   :  { %v99_v8 = vpop.f32.mrb[0].mxu0 }
  0xed   :  { %v100_v9 = vadd.f32 %v268_v7, %v99_v8  ;;  %v291_v10 = vpop.f32.mrb[1].mxu0 }
  0xee   :  { %v102_v11 = vpop.f32.mrb[2].mxu0 }
  0xef   :  { %v105_v12 = vmax.f32 %v100_v9, 0.0  ;;  %v292_v13 = vpop.f32.mrb[3].mxu0 }
  0xf1   :  { %v106_v14 = vpack.c.bf16 %v105_v12, %v105_v12 }
  0xf3   :  { %298 = vmatmul.mubr.msk.bf16.vlgmr.msra.gmra.mrb[0].mxu1 %vm129_vm2, %v106_v14 }
 0x1c6   :  { %v167_v17 = vpop.f32.mrb[0].mxu1 }
 0x1c7   :  { %v168_v18 = vadd.f32 %v271_v16, %v167_v17  ;;  %v299_v19 = vpop.f32.mrb[1].mxu1 }
 0x1c8   :  { %v170_v20 = vpop.f32.mrb[2].mxu1 }
 0x1c9   :  { %v173_v21 = vmax.f32 %v168_v18, 0.0  ;;  %v300_v22 = vpop.f32.mrb[3].mxu1 }
 0x1cb   :  { %v174_v23 = vpack.c.bf16 %v173_v21, %v173_v21 }
 0x1cd   :  { %306 = vmatmul.mubr.msk.bf16.vlgmr.msra.gmra.mrb[4].mxu0 %vm129_vm2, %v174_v23 }
 0x2a0   :  { %v234_v25 = vpop.f32.mrb[4].mxu0 }
 0x2a1   :  { %v235_v26 = vadd.f32 %v275_v24, %v234_v25  ;;  %v307_v27 = vpop.f32.mrb[5].mxu0 }
 0x2a2   :  { %v237_v28 = vpop.f32.mrb[6].mxu0 }
 0x2a3   :  { %v308_v29 = vpop.f32.mrb[7].mxu0  ;;  %v241_v30 = vsel %vm240_vm3, %v235_v26, -inf }
 0x2a4   :  { %242 = vmax.xlane.f32.xlu0 %v241_v30 }
 0x331   :  { %v243_v31 = vpop.xlane.xlu0 %242 }
 0x332   :  { %v244_v32 = vsub.f32 %v235_v26, %v243_v31 }
 0x334   :  { %v245_v33 = vmul.f32 1.442695, %v244_v32 }
 0x336   :  { %320 = vpow2.f32 %v245_v33 }
 0x340   :  { %v321_v34 = vpop.eup %320 }
 0x341   :  { %v247_v35 = vsel %vm240_vm3, %v321_v34, 0.0 }
 0x342   :  { %248 = vadd.xlane.f32.xlu0 %v247_v35 }
 0x3cf   :  { %v249_v36 = vpop.xlane.xlu0 %248 }
 0x3d0   :  { %322 = vrcp.f32 %v249_v36 }
 0x3da   :  { %v323_v37 = vpop.eup %322 }
 0x3db   :  { %v251_v38 = vmul.f32 %v323_v37, %v321_v34 }
 0x3dd   :  { %252 = vst.msk [vmem:[#allocation5] sm:$0xff] %vm240_vm3, %v251_v38 }
 0x3de   :  { %357 = shalt.err (!%p354_p12)
}
 0x3df   :  { %s358_s29 = scalar_lea.hbm %s476_s7, 128 }
 0x3e0   :  { %p359_p13 = scmp.ne.s32.totalorder %s476_s7, %s358_s29  ;;  %p362_p0 = scmp.lt.u32.totalorder %s358_s29, %s476_s7 }
 0x3e2   :  { %p364_p1 = pnand %p362_p0, %p359_p13 }
 0x3e4   :  { %367 = shalt.err (!%p364_p1)
}
 0x3e5   :  { %262 = dma.vmem_to_hbm [thread:$0]  %s260_s5, 128, %s476_s7, [#allocation4]  }
 0x3e6   :  { %370 = dma.done.wait [#allocation4], 128  }
 0x3e7   :  { %371 = vsyncadd [#allocation4], 4294967168 }
 0x3e8   :  { %266 = vsyncpa [#allocation3], 1 }
 0x3e9   :  { %267 = vsyncpa [#allocation4], 1 }

</bundles_post_ra>
